<compile_context>
chip_gen: v7x
topology: tpu7x:2x2x1
jax: 0.10.0
libtpu: 0.0.40
codegen_flags: <defaults>
</compile_context>

<pallas_src>
import jax
import jax.numpy as jnp
from jax import lax
from jax.experimental import pallas as pl
from jax.experimental.pallas import tpu as pltpu


_LANE = 128  # output channels padded to a multiple of this (lane-dense stores)


# ---------------------------------------------------------------------------
# Pallas kernels (BN scale pre-folded into weights; bias-only in kernel)
# ---------------------------------------------------------------------------
def _matmul_bias_relu_kernel(p_ref, w_ref, b_ref, o_ref):
    # conv (im2col matmul, bf16 in / f32 acc) + folded-BN bias + ReLU
    acc = jnp.dot(p_ref[...], w_ref[...], preferred_element_type=jnp.float32)
    o_ref[...] = jnp.maximum(acc + b_ref[...], 0.0).astype(o_ref.dtype)


def _matmul_bias_add_relu_kernel(p_ref, w_ref, b_ref, r_ref, o_ref):
    # conv + folded-BN bias + identity-shortcut residual add + ReLU
    acc = jnp.dot(p_ref[...], w_ref[...], preferred_element_type=jnp.float32)
    acc = acc + b_ref[...] + r_ref[...].astype(jnp.float32)
    o_ref[...] = jnp.maximum(acc, 0.0).astype(o_ref.dtype)


# ---------------------------------------------------------------------------
# Tiling helpers
# ---------------------------------------------------------------------------
def _round_up(x, m):
    return (x + m - 1) // m * m


def _cdiv(a, b):
    return (a + b - 1) // b


def _pick_tm(M, max_tm=512):
    # Large row tile (multiple of 16 for bf16 sublane packing), capped at 512
    # to stay well inside VMEM with double-buffering; always aim for >= 2 grid
    # steps so both v7x TensorCores are used.
    M16 = _round_up(max(M, 1), 16)
    ntiles = max(2, _cdiv(M16, max_tm))
    return max(16, _round_up(_cdiv(M16, ntiles), 16))


def _matmul_bias_act(patches, w, bias, residual=None, out_dtype=jnp.float32):
    """o = relu(patches @ w + bias [+ residual]), tiled over rows."""
    M, K = patches.shape
    Cp = w.shape[1]
    tm = _pick_tm(M)
    Mp = _round_up(M, tm)
    if Mp != M:
        patches = jnp.pad(patches, ((0, Mp - M), (0, 0)))
        if residual is not None:
            residual = jnp.pad(residual, ((0, Mp - M), (0, 0)))
    bias2d = bias.reshape(1, Cp).astype(jnp.float32)

    in_specs = [
        pl.BlockSpec((tm, K), lambda i: (i, 0)),
        pl.BlockSpec((K, Cp), lambda i: (0, 0)),   # constant across grid
        pl.BlockSpec((1, Cp), lambda i: (0, 0)),   # constant across grid
    ]
    args = [patches, w, bias2d]
    if residual is None:
        kernel = _matmul_bias_relu_kernel
    else:
        kernel = _matmul_bias_add_relu_kernel
        in_specs.append(pl.BlockSpec((tm, Cp), lambda i: (i, 0)))
        args.append(residual)

    bytes_accessed = (Mp * K * patches.dtype.itemsize
                      + K * Cp * w.dtype.itemsize
                      + Mp * Cp * jnp.dtype(out_dtype).itemsize)
    if residual is not None:
        bytes_accessed += Mp * Cp * residual.dtype.itemsize

    out = pl.pallas_call(
        kernel,
        out_shape=jax.ShapeDtypeStruct((Mp, Cp), out_dtype),
        grid=(Mp // tm,),
        in_specs=in_specs,
        out_specs=pl.BlockSpec((tm, Cp), lambda i: (i, 0)),
        compiler_params=pltpu.CompilerParams(
            dimension_semantics=("parallel",),
            vmem_limit_bytes=48 * 1024 * 1024,
        ),
        cost_estimate=pl.CostEstimate(
            flops=2 * Mp * K * Cp,
            transcendentals=0,
            bytes_accessed=bytes_accessed),
    )(*args)
    return out[:M]


# ---------------------------------------------------------------------------
# JAX-side glue: im2col taps, BN folding, weight prep
# ---------------------------------------------------------------------------
def _im2col_cols(x_nhwc, ksize, stride, pad):
    N, H, W, C = x_nhwc.shape
    xp = jnp.pad(x_nhwc, ((0, 0), (pad, pad), (pad, pad), (0, 0)))
    Ho = (H + 2 * pad - ksize) // stride + 1
    Wo = (W + 2 * pad - ksize) // stride + 1
    cols = [xp[:, ky:ky + stride * Ho:stride, kx:kx + stride * Wo:stride, :]
            for ky in range(ksize) for kx in range(ksize)]
    return cols, Ho, Wo


def _fold_bn(gamma, beta, mean, var, eps=1e-5):
    scale = gamma / jnp.sqrt(var + eps)
    bias = beta - mean * scale
    return scale.astype(jnp.float32), bias.astype(jnp.float32)


def _prep_weight(w_oihw, scale, cin_pad, cout_pad):
    # (Cout, Cin, KH, KW) -> (KH*KW*cin_pad, cout_pad) bf16 with the BN scale
    # folded in; tap ordering (ky, kx, cin) matches _im2col_cols.
    Cout, Cin, KH, KW = w_oihw.shape
    w = jnp.transpose(w_oihw, (2, 3, 1, 0)).astype(jnp.float32) * scale
    w = jnp.pad(w, ((0, 0), (0, 0), (0, cin_pad - Cin), (0, cout_pad - Cout)))
    return w.reshape(KH * KW * cin_pad, cout_pad).astype(jnp.bfloat16)


# ---------------------------------------------------------------------------
# Full BasicBlock forward
# ---------------------------------------------------------------------------
def basic_block_forward(x_nchw, params, stride):
    x = jnp.transpose(x_nchw, (0, 2, 3, 1)).astype(jnp.float32)   # NHWC
    N, H, W, Cin = x.shape
    Cout = params["conv1_w"].shape[0]
    Cp = _round_up(Cout, _LANE)            # lane-dense channel padding

    s1, b1 = _fold_bn(params["bn1_gamma"], params["bn1_beta"],
                      params["bn1_mean"], params["bn1_var"])
    s2, b2 = _fold_bn(params["bn2_gamma"], params["bn2_beta"],
                      params["bn2_mean"], params["bn2_var"])

    # ---- conv1 + bn1 + ReLU (BN scale folded into weight) ----
    w1 = _prep_weight(params["conv1_w"], s1, Cin, Cp)          # (9*Cin, Cp)
    b1p = jnp.pad(b1, (0, Cp - Cout))
    cols1, Ho, Wo = _im2col_cols(x.astype(jnp.bfloat16), 3, stride, 1)
    M = N * Ho * Wo
    p1 = jnp.concatenate(cols1, axis=-1).reshape(M, 9 * Cin)
    out1 = _matmul_bias_act(p1, w1, b1p, out_dtype=jnp.bfloat16)  # (M, Cp)
    out1_nhwc = out1.reshape(N, Ho, Wo, Cp)     # padded channels are exact 0

    # ---- conv2 + bn2 (+ shortcut) + residual add + ReLU ----
    w2 = _prep_weight(params["conv2_w"], s2, Cp, Cp)           # (9*Cp, Cp)
    b2p = jnp.pad(b2, (0, Cp - Cout))
    cols2, _, _ = _im2col_cols(out1_nhwc, 3, 1, 1)

    if params.get("shortcut_w") is not None:
        # Projection shortcut: fuse the 1x1 conv into the same matmul by
        # appending the strided input as an extra tap group along K.
        ssc, bsc = _fold_bn(params["bn_sc_gamma"], params["bn_sc_beta"],
                            params["bn_sc_mean"], params["bn_sc_var"])
        wsc = _prep_weight(params["shortcut_w"], ssc, Cin, Cp)   # (Cin, Cp)
        xs = x[:, ::stride, ::stride, :].astype(jnp.bfloat16)    # (N,Ho,Wo,Cin)
        pcat = jnp.concatenate(cols2 + [xs], axis=-1).reshape(M, 9 * Cp + Cin)
        wcat = jnp.concatenate([w2, wsc], axis=0)                # (9*Cp+Cin, Cp)
        bcat = b2p + jnp.pad(bsc, (0, Cp - Cout))
        out = _matmul_bias_act(pcat, wcat, bcat, out_dtype=jnp.float32)
    else:
        # Identity shortcut: no eye-matmul; residual added inside the kernel.
        assert stride == 1 and Cin == Cout, \
            "identity shortcut requires stride==1 and Cin==Cout"
        p2 = jnp.concatenate(cols2, axis=-1).reshape(M, 9 * Cp)
        res = jnp.pad(x, ((0, 0), (0, 0), (0, 0), (0, Cp - Cout))).reshape(M, Cp)
        out = _matmul_bias_act(p2, w2, b2p, residual=res, out_dtype=jnp.float32)

    out_nhwc = out[:, :Cout].reshape(N, Ho, Wo, Cout)
    return jnp.transpose(out_nhwc, (0, 3, 1, 2)).astype(x_nchw.dtype)  # NCHW


# ---------------------------------------------------------------------------
# Pure-JAX reference (for numerical check)
# ---------------------------------------------------------------------------
def _ref_forward(x, params, stride, eps=1e-5):
    def conv(z, w, s, pad):
        return lax.conv_general_dilated(
            z, w, (s, s), [(pad, pad), (pad, pad)],
            dimension_numbers=("NCHW", "OIHW", "NCHW"))

    def bn(z, g, b, m, v):
        sh = (1, -1, 1, 1)
        return (z - m.reshape(sh)) / jnp.sqrt(v.reshape(sh) + eps) * g.reshape(sh) + b.reshape(sh)

    out = jax.nn.relu(bn(conv(x, params["conv1_w"], stride, 1),
                         params["bn1_gamma"], params["bn1_beta"],
                         params["bn1_mean"], params["bn1_var"]))
    out = bn(conv(out, params["conv2_w"], 1, 1),
             params["bn2_gamma"], params["bn2_beta"],
             params["bn2_mean"], params["bn2_var"])
    if params.get("shortcut_w") is not None:
        sc = bn(conv(x, params["shortcut_w"], stride, 0),
                params["bn_sc_gamma"], params["bn_sc_beta"],
                params["bn_sc_mean"], params["bn_sc_var"])
    else:
        sc = x
    return jax.nn.relu(out + sc)


# ---------------------------------------------------------------------------
def _make_params(key, cin, cout, with_shortcut):
    f32 = jnp.float32
    ks = jax.random.split(key, 16)

    def bn_params(k0, k1, k2, k3):
        return (1.0 + 0.1 * jax.random.normal(k0, (cout,), f32),
                0.1 * jax.random.normal(k1, (cout,), f32),
                0.1 * jax.random.normal(k2, (cout,), f32),
                0.5 + jnp.abs(jax.random.normal(k3, (cout,), f32)))

    g1, be1, m1, v1 = bn_params(*ks[1:5])
    g2, be2, m2, v2 = bn_params(*ks[6:10])
    params = {
        "conv1_w": 0.1 * jax.random.normal(ks[0], (cout, cin, 3, 3), f32),
        "bn1_gamma": g1, "bn1_beta": be1, "bn1_mean": m1, "bn1_var": v1,
        "conv2_w": 0.1 * jax.random.normal(ks[5], (cout, cout, 3, 3), f32),
        "bn2_gamma": g2, "bn2_beta": be2, "bn2_mean": m2, "bn2_var": v2,
    }
    if with_shortcut:
        gs, bes, ms, vs = bn_params(*ks[11:15])
        params.update({
            "shortcut_w": 0.1 * jax.random.normal(ks[10], (cout, cin, 1, 1), f32),
            "bn_sc_gamma": gs, "bn_sc_beta": bes,
            "bn_sc_mean": ms, "bn_sc_var": vs,
        })
    return params


if __name__ == "__main__":
    key = jax.random.PRNGKey(0)
    k_proj, k_id, kx1, kx2 = jax.random.split(key, 4)

    fwd = jax.jit(basic_block_forward, static_argnames=("stride",))

    # Case 1: downsampling block (stride=2, Cin != Cout) -> projection shortcut.
    N, Cin, Cout, H, W, stride = 2, 4, 8, 16, 16, 2
    params = _make_params(k_proj, Cin, Cout, with_shortcut=True)
    x = jax.random.normal(kx1, (N, Cin, H, W), jnp.float32)
    out = jax.block_until_ready(fwd(x, params, stride=stride))
    ref = jax.block_until_ready(_ref_forward(x, params, stride))
    assert out.shape == ref.shape == (N, Cout, H // stride, W // stride), out.shape
    # bf16 MXU path: compare at bf16-appropriate tolerance
    assert jnp.allclose(out, ref, rtol=2e-2, atol=2e-2), \
        float(jnp.max(jnp.abs(out - ref)))

    # Case 2: identity-shortcut block (stride=1, Cin == Cout).
    Cin2 = Cout2 = 8
    params2 = _make_params(k_id, Cin2, Cout2, with_shortcut=False)
    x2 = jax.random.normal(kx2, (N, Cin2, H, W), jnp.float32)
    out2 = jax.block_until_ready(fwd(x2, params2, stride=1))
    ref2 = jax.block_until_ready(_ref_forward(x2, params2, 1))
    assert out2.shape == ref2.shape == (N, Cout2, H, W), out2.shape
    assert jnp.allclose(out2, ref2, rtol=2e-2, atol=2e-2), \
        float(jnp.max(jnp.abs(out2 - ref2)))

    print("KERNEL_OK")
</pallas_src>

<mosaic_0001>
module attributes {stable_mosaic.version = 11 : i64} {
  func.func @_matmul_bias_relu_kernel(%arg0: i32, %arg1: memref<64x36xbf16, #tpu.memory_space<vmem>>, %arg2: memref<36x128xbf16, #tpu.memory_space<vmem>>, %arg3: memref<1x128xf32, #tpu.memory_space<vmem>>, %arg4: memref<64x128xbf16, #tpu.memory_space<vmem>>) attributes {dimension_semantics = [#tpu.dimension_semantics<parallel>], iteration_bounds = array<i64: 2>, scalar_prefetch = 0 : i64, scratch_operands = 0 : i64, tpu.core_type = #tpu.core_type<tc>, window_params = [{transform_indices = @transform_0, window_bounds = array<i64: 64, 36>}, {pipeline_mode = #tpu.pipeline_mode<synchronous>, transform_indices = @transform_1, window_bounds = array<i64: 36, 128>}, {pipeline_mode = #tpu.pipeline_mode<synchronous>, transform_indices = @transform_2, window_bounds = array<i64: 1, 128>}, {transform_indices = @transform_3, window_bounds = array<i64: 64, 128>}]} {
    %c0 = arith.constant 0 : index
    %c0_0 = arith.constant 0 : index
    %0 = vector.load %arg1[%c0, %c0_0] : memref<64x36xbf16, #tpu.memory_space<vmem>>, vector<64x36xbf16>
    %c0_1 = arith.constant 0 : index
    %c0_2 = arith.constant 0 : index
    %1 = vector.load %arg2[%c0_1, %c0_2] : memref<36x128xbf16, #tpu.memory_space<vmem>>, vector<36x128xbf16>
    %cst = arith.constant dense<0.000000e+00> : vector<64x128xf32>
    %2 = tpu.matmul %0, %1, %cst {dimension_numbers = #tpu.dot_dimension_numbers<[1], [0], [0], [1], [0, 0, 1, 1], [], []>} : vector<64x36xbf16>, vector<36x128xbf16>, vector<64x128xf32> -> vector<64x128xf32>
    %c0_3 = arith.constant 0 : index
    %c0_4 = arith.constant 0 : index
    %3 = vector.load %arg3[%c0_3, %c0_4] : memref<1x128xf32, #tpu.memory_space<vmem>>, vector<1x128xf32>
    %4 = vector.broadcast %3 : vector<1x128xf32> to vector<64x128xf32>
    %5 = arith.addf %2, %4 : vector<64x128xf32>
    %cst_5 = arith.constant 0.000000e+00 : f32
    %6 = vector.broadcast %cst_5 : f32 to vector<64x128xf32>
    %7 = arith.maximumf %5, %6 : vector<64x128xf32>
    %8 = arith.truncf %7 : vector<64x128xf32> to vector<64x128xbf16>
    %c0_6 = arith.constant 0 : index
    %c0_7 = arith.constant 0 : index
    %9 = vector.load %arg4[%c0_6, %c0_7] : memref<64x128xbf16, #tpu.memory_space<vmem>>, vector<64x128xbf16>
    tpu.vector_store %arg4[%c0_6, %c0_7], %8 {strides = array<i32>} : memref<64x128xbf16, #tpu.memory_space<vmem>>, vector<64x128xbf16>,
    return
  }
  func.func @transform_0(%arg0: i32) -> (i32, i32) {
    %c0_i32 = arith.constant 0 : i32
    %c0_i32_0 = arith.constant 0 : i32
    return %arg0, %c0_i32 : i32, i32
  }
  func.func @transform_1(%arg0: i32) -> (i32, i32) {
    %c0_i32 = arith.constant 0 : i32
    %c0_i32_0 = arith.constant 0 : i32
    %c0_i32_1 = arith.constant 0 : i32
    return %c0_i32, %c0_i32_0 : i32, i32
  }
  func.func @transform_2(%arg0: i32) -> (i32, i32) {
    %c0_i32 = arith.constant 0 : i32
    %c0_i32_0 = arith.constant 0 : i32
    %c0_i32_1 = arith.constant 0 : i32
    return %c0_i32, %c0_i32_0 : i32, i32
  }
  func.func @transform_3(%arg0: i32) -> (i32, i32) {
    %c0_i32 = arith.constant 0 : i32
    %c0_i32_0 = arith.constant 0 : i32
    return %arg0, %c0_i32 : i32, i32
  }
}

module attributes {stable_mosaic.version = 11 : i64} {
  func.func @_matmul_bias_relu_kernel(%arg0: i32, %arg1: memref<64x1156xbf16, #tpu.memory_space<vmem>>, %arg2: memref<1156x128xbf16, #tpu.memory_space<vmem>>, %arg3: memref<1x128xf32, #tpu.memory_space<vmem>>, %arg4: memref<64x128xf32, #tpu.memory_space<vmem>>) attributes {dimension_semantics = [#tpu.dimension_semantics<parallel>], iteration_bounds = array<i64: 2>, scalar_prefetch = 0 : i64, scratch_operands = 0 : i64, tpu.core_type = #tpu.core_type<tc>, window_params = [{transform_indices = @transform_0, window_bounds = array<i64: 64, 1156>}, {pipeline_mode = #tpu.pipeline_mode<synchronous>, transform_indices = @transform_1, window_bounds = array<i64: 1156, 128>}, {pipeline_mode = #tpu.pipeline_mode<synchronous>, transform_indices = @transform_2, window_bounds = array<i64: 1, 128>}, {transform_indices = @transform_3, window_bounds = array<i64: 64, 128>}]} {
    %c0 = arith.constant 0 : index
    %c0_0 = arith.constant 0 : index
    %0 = vector.load %arg1[%c0, %c0_0] : memref<64x1156xbf16, #tpu.memory_space<vmem>>, vector<64x1156xbf16>
    %c0_1 = arith.constant 0 : index
    %c0_2 = arith.constant 0 : index
    %1 = vector.load %arg2[%c0_1, %c0_2] : memref<1156x128xbf16, #tpu.memory_space<vmem>>, vector<1156x128xbf16>
    %cst = arith.constant dense<0.000000e+00> : vector<64x128xf32>
    %2 = tpu.matmul %0, %1, %cst {dimension_numbers = #tpu.dot_dimension_numbers<[1], [0], [0], [1], [0, 0, 1, 1], [], []>} : vector<64x1156xbf16>, vector<1156x128xbf16>, vector<64x128xf32> -> vector<64x128xf32>
    %c0_3 = arith.constant 0 : index
    %c0_4 = arith.constant 0 : index
    %3 = vector.load %arg3[%c0_3, %c0_4] : memref<1x128xf32, #tpu.memory_space<vmem>>, vector<1x128xf32>
    %4 = vector.broadcast %3 : vector<1x128xf32> to vector<64x128xf32>
    %5 = arith.addf %2, %4 : vector<64x128xf32>
    %cst_5 = arith.constant 0.000000e+00 : f32
    %6 = vector.broadcast %cst_5 : f32 to vector<64x128xf32>
    %7 = arith.maximumf %5, %6 : vector<64x128xf32>
    %c0_6 = arith.constant 0 : index
    %c0_7 = arith.constant 0 : index
    %8 = vector.load %arg4[%c0_6, %c0_7] : memref<64x128xf32, #tpu.memory_space<vmem>>, vector<64x128xf32>
    tpu.vector_store %arg4[%c0_6, %c0_7], %7 {strides = array<i32>} : memref<64x128xf32, #tpu.memory_space<vmem>>, vector<64x128xf32>,
    return
  }
  func.func @transform_0(%arg0: i32) -> (i32, i32) {
    %c0_i32 = arith.constant 0 : i32
    %c0_i32_0 = arith.constant 0 : i32
    return %arg0, %c0_i32 : i32, i32
  }
  func.func @transform_1(%arg0: i32) -> (i32, i32) {
    %c0_i32 = arith.constant 0 : i32
    %c0_i32_0 = arith.constant 0 : i32
    %c0_i32_1 = arith.constant 0 : i32
    return %c0_i32, %c0_i32_0 : i32, i32
  }
  func.func @transform_2(%arg0: i32) -> (i32, i32) {
    %c0_i32 = arith.constant 0 : i32
    %c0_i32_0 = arith.constant 0 : i32
    %c0_i32_1 = arith.constant 0 : i32
    return %c0_i32, %c0_i32_0 : i32, i32
  }
  func.func @transform_3(%arg0: i32) -> (i32, i32) {
    %c0_i32 = arith.constant 0 : i32
    %c0_i32_0 = arith.constant 0 : i32
    return %arg0, %c0_i32 : i32, i32
  }
}

</mosaic_0001>

<bundles_post_ra>
// kernel: basic_block_forward.2
= control target key start
LH: loop header
LB: loop body
LE: loop exit
PB: predicated region body
PF: predicated region fallthrough
CT: control target
= control target key end

     0   :  { %s550_s12 = smov 0   ;;  %s586_s0 = inlined_call_operand.vmem [shape: bf16[128,36], index: 0, kind: input, shape index: {}]   ;;  %s587_s1 = inlined_call_operand.vmem [shape: bf16[36,128], index: 1, kind: input, shape index: {}]   ;;  %s588_s2 = inlined_call_operand.vmem [shape: f32[1,128], index: 2, kind: input, shape index: {}]   ;;  %s589_s3 = inlined_call_operand.vmem [shape: bf16[128,128], index: 3, kind: output, shape index: {}]  }
   0x1 LB: > { %s416_s13 = sadd.s32 4294967295, %s528_s12   ;;  %p420_p0 = scmp.ge.s32.totalorder %s528_s12, 1  ;;  %s528_s12 = sphi %s550_s12, %s13_s12  }
   0x2   : > { %p138_p1 = scmp.lt.s32.totalorder %s528_s12, 3 }
   0x4   : > { %p139_p2 = pnand %p420_p0, %p138_p1 }
   0x5   : > { %v515_v0 = vld [vmem:[%s587_s1] sm:$0xff] (!%p139_p2)   ;;  %v516_v1 = vld [vmem:[%s587_s1 + $0x8] sm:$0xff] (!%p139_p2)   ;;  %s421_s18 = sshll.u32 (!%p139_p2), %s416_s13, 3  ;;  %v517_v2 = vld [vmem:[%s587_s1 + $0x10] ss:$0 sps:$4 sm:$0x33] (!%p139_p2)  }
   0x6   : > { %142 = sbr.rel (%p139_p2) target bundleno = 240 (0xf0), region = 32  ;;  %485 = vmatprep.subr.bf16.mxu0 (!%p139_p2), %v515_v0  ;;  %499 = vmatprep.subr.bf16.mxu1 (!%p139_p2), %v515_v0  ;;  %p163_p3 = scmp.lt.s32.totalorder (!%p139_p2), %s421_s18, 15  ;;  %vm243_vm0 = vcmask (!%p139_p2), 1041408   ;;  %vm230_vm1 = vcmask (!%p139_p2), 293888   ;;  %v425_v8 = vld [vmem:[%s588_s2] ss:$0 sm:$0xff] (!%p139_p2) }
   0x7   : > { %486 = vmatpush3.bf16.msra.mxu0 (!%p139_p2), %v515_v0  ;;  %502 = vmatpush3.bf16.msra.mxu1 (!%p139_p2), %v515_v0  ;;  %v245_v3 = vsel (!%p139_p2), %vm243_vm0, %v517_v2, 0 }
   0x8   : > { %487 = vmatprep.subr.bf16.mxu0 (!%p139_p2), %v516_v1  ;;  %500 = vmatprep.subr.bf16.mxu1 (!%p139_p2), %v516_v1 }
   0xb   : > { %488 = vmatpush3.bf16.msra.mxu0 (!%p139_p2), %v516_v1  ;;  %503 = vmatpush3.bf16.msra.mxu1 (!%p139_p2), %v516_v1 }
   0xc   : > { %505 = vmatprep.subr.msk.bf16.mxu0 (!%p139_p2), %vm243_vm0, %v517_v2  ;;  %506 = vmatprep.subr.msk.bf16.mxu1 (!%p139_p2), %vm243_vm0, %v517_v2 }
   0xd   : > { %s591_s18 = smov (!%p163_p3, %s421_s18), 15 }
   0xe   : > { %s422_s21 = sshll.u32 %s591_s18, 2 }
   0xf   : > { %s166_s24 = scalar_lea.vmem %s586_s0, %s422_s21  ;;  %490 = vmatpush3.bf16.msra.mxu0 %v245_v3  ;;  %504 = vmatpush3.bf16.msra.mxu1 %v245_v3  ;;  %s172_s29 = scalar_lea.vmem %s589_s3, %s422_s21 }
  0x10   : > { %v518_v4 = vld [vmem:[%s166_s24] sm:$0xff]   ;;  %v519_v5 = vld [vmem:[%s166_s24 + $0x10] sm:$0xff]   ;;  %v520_v6 = vld [vmem:[%s166_s24 + $0x8] sm:$0xff]  }
  0x11   : > { %491 = vmatprep.mubr.msk.bf16.mxu0 %vm230_vm1, %v518_v4  ;;  %v521_v7 = vld [vmem:[%s166_s24 + $0x18] sm:$0xff]   ;;  %495 = vmatprep.mubr.msk.bf16.mxu1 %vm230_vm1, %v519_v5 }
  0x12   : > { %492 = vmatmul.mubr.msk.bf16.vlgmr.msra.gmra.mrb[0].mxu0 %vm230_vm1, %v520_v6  ;;  %496 = vmatmul.mubr.msk.bf16.vlgmr.msra.gmra.mrb[0].mxu1 %vm230_vm1, %v521_v7 }
  0xe5   : > { %v493_v9 = vpop.f32.mrb[0].mxu0  ;;  %v497_v10 = vpop.f32.mrb[0].mxu1 }
  0xe6   : > { %v290_v11 = vadd.f32 %v493_v9, %v425_v8  ;;  %v306_v12 = vadd.f32 %v497_v10, %v425_v8  ;;  %v281_v13 = vpop.f32.mrb[1].mxu0  ;;  %v297_v14 = vpop.f32.mrb[1].mxu1 }
  0xe7   : > { %v282_v15 = vadd.f32 %v425_v8, %v281_v13  ;;  %v298_v16 = vadd.f32 %v425_v8, %v297_v14  ;;  %v494_v17 = vpop.f32.mrb[2].mxu0  ;;  %v498_v18 = vpop.f32.mrb[2].mxu1 }
  0xe8   : > { %v293_v19 = vadd.f32 %v494_v17, %v425_v8  ;;  %v309_v20 = vadd.f32 %v498_v18, %v425_v8  ;;  %v284_v21 = vpop.f32.mrb[3].mxu0  ;;  %v300_v22 = vpop.f32.mrb[3].mxu1  ;;  %v314_v25 = vmax.f32 %v290_v11, 0.0  ;;  %v318_v26 = vmax.f32 %v306_v12, 0.0 }
  0xe9   : > { %v285_v23 = vadd.f32 %v425_v8, %v284_v21  ;;  %v301_v24 = vadd.f32 %v425_v8, %v300_v22  ;;  %v312_v29 = vmax.f32 %v282_v15, 0.0  ;;  %v316_v30 = vmax.f32 %v298_v16, 0.0 }
  0xea   : > { %v315_v27 = vmax.f32 %v293_v19, 0.0  ;;  %v319_v28 = vmax.f32 %v309_v20, 0.0 }
  0xeb   : > { %v313_v31 = vmax.f32 %v285_v23, 0.0  ;;  %v317_v32 = vmax.f32 %v301_v24, 0.0 }
  0xec   : > { %v463_v33 = vpack.c.bf16 %v315_v27, %v314_v25  ;;  %v473_v34 = vpack.c.bf16 %v319_v28, %v318_v26 }
  0xed   : > { %v458_v35 = vpack.c.bf16 %v313_v31, %v312_v29  ;;  %v468_v36 = vpack.c.bf16 %v317_v32, %v316_v30 }
  0xee   : > { %475 = vst [vmem:[%s172_s29 + $0x8] sm:$0xff] %v463_v33   ;;  %477 = vst [vmem:[%s172_s29 + $0x18] sm:$0xff] %v473_v34  }
  0xef   : > { %459 = vst [vmem:[%s172_s29] sm:$0xff] %v458_v35   ;;  %476 = vst [vmem:[%s172_s29 + $0x10] sm:$0xff] %v468_v36  }
  0xf0 PF: > { %s13_s12 = sadd.s32 1, %s528_s12  }
  0xf1   : > { %p10_p4 = scmp.ge.s32.totalorder %s13_s12, 4  }
  0xf3   :  { %12 = sbr.rel (!%p10_p4) target bundleno = 1 (0x1), region = 62 }

// kernel: basic_block_forward.3
= control target key start
LH: loop header
LB: loop body
LE: loop exit
PB: predicated region body
PF: predicated region fallthrough
CT: control target
= control target key end

     0   :  { %s1894_s12 = smov 0   ;;  %s2213_s0 = inlined_call_operand.vmem [shape: bf16[128,1156], index: 0, kind: input, shape index: {}]   ;;  %s2214_s1 = inlined_call_operand.vmem [shape: bf16[1156,128], index: 1, kind: input, shape index: {}]   ;;  %s2215_s2 = inlined_call_operand.vmem [shape: f32[1,128], index: 2, kind: input, shape index: {}]   ;;  %s2216_s3 = inlined_call_operand.vmem [shape: f32[128,128], index: 3, kind: output, shape index: {}]  }
   0x1 LB: > { %s1415_s13 = sadd.s32 4294967295, %s1871_s12   ;;  %p1419_p0 = scmp.ge.s32.totalorder %s1871_s12, 1  ;;  %s1871_s12 = sphi %s1894_s12, %s13_s12  }
   0x2   : > { %p139_p1 = scmp.lt.s32.totalorder %s1871_s12, 3 }
   0x4   : > { %p140_p2 = pnand %p1419_p0, %p139_p1 }
   0x5   : > { %v1732_v0 = vld [vmem:[%s2214_s1 + $0x40] sm:$0xff] (!%p140_p2)   ;;  %v1736_v4 = vld [vmem:[%s2214_s1 + $0x48] sm:$0xff] (!%p140_p2)   ;;  %v1740_v8 = vld [vmem:[%s2214_s1 + $0x50] sm:$0xff] (!%p140_p2)   ;;  %s1420_s19 = sshll.u32 (!%p140_p2), %s1415_s13, 3  ;;  %vm1001_vm0 = vcmask (!%p140_p2), 31744   ;;  %vm1014_vm1 = vcmask (!%p140_p2), 1041408  }
   0x6   : > { %143 = sbr.rel (%p140_p2) target bundleno = 335 (0x14f), region = 32  ;;  %v1733_v1 = vld [vmem:[%s2214_s1 + $0xc0] sm:$0xff] (!%p140_p2)   ;;  %1544 = vmatprep.subr.bf16.mxu0 (!%p140_p2), %v1732_v0  ;;  %v1737_v5 = vld [vmem:[%s2214_s1 + $0xc8] sm:$0xff] (!%p140_p2)   ;;  %v1741_v9 = vld [vmem:[%s2214_s1 + $0xd0] sm:$0xff] (!%p140_p2)   ;;  %p165_p3 = scmp.lt.s32.totalorder (!%p140_p2), %s1420_s19, 15 }
   0x7   : > { %v1734_v2 = vld [vmem:[%s2214_s1] sm:$0xff] (!%p140_p2)   ;;  %1584 = vmatprep.subr.bf16.mxu1 (!%p140_p2), %v1733_v1  ;;  %v1738_v6 = vld [vmem:[%s2214_s1 + $0x8] sm:$0xff] (!%p140_p2)   ;;  %v1742_v10 = vld [vmem:[%s2214_s1 + $0x10] sm:$0xff] (!%p140_p2)  }
   0x8   : > { %v1735_v3 = vld [vmem:[%s2214_s1 + $0x80] sm:$0xff] (!%p140_p2)   ;;  %1545 = vmatpush3.bf16.msra.mxu0 (!%p140_p2), %v1734_v2  ;;  %v1739_v7 = vld [vmem:[%s2214_s1 + $0x88] sm:$0xff] (!%p140_p2)   ;;  %v1743_v11 = vld [vmem:[%s2214_s1 + $0x90] sm:$0xff] (!%p140_p2)  }
   0x9   : > { %1585 = vmatpush3.bf16.msra.mxu1 (!%p140_p2), %v1735_v3  ;;  %1546 = vmatprep.subr.bf16.mxu0 (!%p140_p2), %v1736_v4  ;;  %v1744_v12 = vld [vmem:[%s2214_s1 + $0x58] sm:$0xff] (!%p140_p2)   ;;  %v1748_v16 = vld [vmem:[%s2214_s1 + $0x60] sm:$0xff] (!%p140_p2)   ;;  %v1752_v20 = vld [vmem:[%s2214_s1 + $0x68] sm:$0xff] (!%p140_p2)  }
   0xa   : > { %1586 = vmatprep.subr.bf16.mxu1 (!%p140_p2), %v1737_v5  ;;  %v1745_v13 = vld [vmem:[%s2214_s1 + $0xd8] sm:$0xff] (!%p140_p2)   ;;  %v1749_v17 = vld [vmem:[%s2214_s1 + $0xe0] sm:$0xff] (!%p140_p2)   ;;  %v1753_v21 = vld [vmem:[%s2214_s1 + $0xe8] sm:$0xff] (!%p140_p2)  }
   0xb   : > { %v1746_v14 = vld [vmem:[%s2214_s1 + $0x18] sm:$0xff] (!%p140_p2)   ;;  %v1750_v18 = vld [vmem:[%s2214_s1 + $0x20] sm:$0xff] (!%p140_p2)   ;;  %v1754_v22 = vld [vmem:[%s2214_s1 + $0x28] sm:$0xff] (!%p140_p2)  }
   0xc   : > { %1547 = vmatpush3.bf16.msra.mxu0 (!%p140_p2), %v1738_v6  ;;  %v1747_v15 = vld [vmem:[%s2214_s1 + $0x98] sm:$0xff] (!%p140_p2)   ;;  %v1751_v19 = vld [vmem:[%s2214_s1 + $0xa0] sm:$0xff] (!%p140_p2)   ;;  %v1755_v23 = vld [vmem:[%s2214_s1 + $0xa8] sm:$0xff] (!%p140_p2)  }
   0xd   : > { %1587 = vmatpush3.bf16.msra.mxu1 %v1739_v7  ;;  %1548 = vmatprep.subr.bf16.mxu0 %v1740_v8  ;;  %s2218_s19 = smov (!%p165_p3, %s1420_s19), 15  ;;  %v1756_v24 = vld [vmem:[%s2214_s1 + $0x70] sm:$0xff]   ;;  %v1760_v28 = vld [vmem:[%s2214_s1 + $0x78] sm:$0xff]   ;;  %v1770_v36 = vld [vmem:[%s2214_s1 + $0x140] sm:$0xff]  }
   0xe   : > { %1588 = vmatprep.subr.bf16.mxu1 %v1741_v9  ;;  %v1757_v25 = vld [vmem:[%s2214_s1 + $0xf0] sm:$0xff]   ;;  %s1722_s16 = smul.u32 40, %s2218_s19  ;;  %v1761_v29 = vld [vmem:[%s2214_s1 + $0xf8] sm:$0xff]   ;;  %v1771_v37 = vld [vmem:[%s2214_s1 + $0x1c0] sm:$0xff]  }
   0xf   : > { %v1758_v26 = vld [vmem:[%s2214_s1 + $0x30] sm:$0xff]   ;;  %v1762_v30 = vld [vmem:[%s2214_s1 + $0x38] sm:$0xff]   ;;  %v1772_v38 = vld [vmem:[%s2214_s1 + $0x100] sm:$0xff]  }
  0x10   : > { %1549 = vmatpush3.bf16.msra.mxu0 %v1742_v10  ;;  %v1759_v27 = vld [vmem:[%s2214_s1 + $0xb0] sm:$0xff]   ;;  %s2000_s13 = scalar_lea.vmem %s2213_s0, %s1722_s16  ;;  %v1763_v31 = vld [vmem:[%s2214_s1 + $0xb8] sm:$0xff]   ;;  %v1773_v39 = vld [vmem:[%s2214_s1 + $0x180] sm:$0xff]  }
  0x11   : > { %1589 = vmatpush3.bf16.msra.mxu1 %v1743_v11  ;;  %1550 = vmatprep.subr.bf16.mxu0 %v1744_v12  ;;  %v1764_v32 = vld [vmem:[%s2000_s13] ss:$40 sps:$4 sm:$0xff]   ;;  %v1766_v33 = vld [vmem:[%s2000_s13 + $0x4] ss:$40 sps:$4 sm:$0xff]   ;;  %v1778_v44 = vld [vmem:[%s2000_s13 + $0x54] ss:$40 sps:$4 sm:$0xff]  }
  0x12   : > { %1590 = vmatprep.subr.bf16.mxu1 %v1745_v13  ;;  %v1767_v34 = vld [vmem:[%s2000_s13 + $0x8] ss:$40 sps:$4 sm:$0xff]   ;;  %v1769_v35 = vld [vmem:[%s2000_s13 + $0xc] ss:$40 sps:$4 sm:$0xff]   ;;  %1050 = vmatprep.mubr.bf16.mxu0 %v1766_v33  ;;  %v1780_v45 = vld [vmem:[%s2000_s13 + $0x5c] ss:$40 sps:$4 sm:$0xff]  }
  0x13   : > { %1115 = vmatprep.mubr.bf16.mxu1 %v1769_v35  ;;  %v1774_v40 = vld [vmem:[%s2214_s1 + $0x148] sm:$0xff]   ;;  %v1782_v46 = vld [vmem:[%s2000_s13 + $0x50] ss:$40 sps:$4 sm:$0xff]   ;;  %v1798_v60 = vld [vmem:[%s2214_s1 + $0x160] sm:$0xff]  }
  0x14   : > { %1551 = vmatpush3.bf16.msra.mxu0 %v1746_v14  ;;  %v1775_v41 = vld [vmem:[%s2214_s1 + $0x1c8] sm:$0xff]   ;;  %v1783_v47 = vld [vmem:[%s2000_s13 + $0x58] ss:$40 sps:$4 sm:$0xff]   ;;  %v1784_v48 = vld [vmem:[%s2214_s1 + $0x150] sm:$0xff]  }
  0x15   : > { %1591 = vmatpush3.bf16.msra.mxu1 %v1747_v15  ;;  %1552 = vmatprep.subr.bf16.mxu0 %v1748_v16  ;;  %v1776_v42 = vld [vmem:[%s2214_s1 + $0x108] sm:$0xff]   ;;  %v1785_v49 = vld [vmem:[%s2214_s1 + $0x1d0] sm:$0xff]   ;;  %v1788_v52 = vld [vmem:[%s2214_s1 + $0x158] sm:$0xff]  }
  0x16   : > { %1592 = vmatprep.subr.bf16.mxu1 %v1749_v17  ;;  %v1777_v43 = vld [vmem:[%s2214_s1 + $0x188] sm:$0xff]   ;;  %v1786_v50 = vld [vmem:[%s2214_s1 + $0x110] sm:$0xff]   ;;  %v1789_v53 = vld [vmem:[%s2214_s1 + $0x1d8] sm:$0xff]  }
  0x17   : > { %v1787_v51 = vld [vmem:[%s2214_s1 + $0x190] sm:$0xff]   ;;  %v1790_v54 = vld [vmem:[%s2214_s1 + $0x118] sm:$0xff]   ;;  %v1792_v56 = vld [vmem:[%s2000_s13 + $0xa4] ss:$40 sps:$4 sm:$0xff]  }
  0x18   : > { %1553 = vmatpush3.bf16.msra.mxu0 %v1750_v18  ;;  %v1791_v55 = vld [vmem:[%s2214_s1 + $0x198] sm:$0xff]   ;;  %v1794_v57 = vld [vmem:[%s2000_s13 + $0xac] ss:$40 sps:$4 sm:$0xff]   ;;  %v1796_v58 = vld [vmem:[%s2000_s13 + $0xa0] ss:$40 sps:$4 sm:$0xff]  }
  0x19   : > { %1593 = vmatpush3.bf16.msra.mxu1 %v1751_v19  ;;  %1554 = vmatprep.subr.bf16.mxu0 %v1752_v20  ;;  %v1797_v59 = vld [vmem:[%s2000_s13 + $0xa8] ss:$40 sps:$4 sm:$0xff]   ;;  %v1799_v61 = vld [vmem:[%s2214_s1 + $0x1e0] sm:$0xff]   ;;  %v1806_v4 = vld [vmem:[%s2000_s13 + $0xf4] ss:$40 sps:$4 sm:$0xff]   ;;  %v1873_v19 = vmov 0  }
  0x1a   : > { %1594 = vmatprep.subr.bf16.mxu1 %v1753_v21  ;;  %v1800_v62 = vld [vmem:[%s2214_s1 + $0x120] sm:$0xff]   ;;  %v1802_v0 = vld [vmem:[%s2214_s1 + $0x168] sm:$0xff]   ;;  %v1810_v6 = vld [vmem:[%s2000_s13 + $0xf0] ss:$40 sps:$4 sm:$0xff]  }
  0x1b   : > { %v1801_v63 = vld [vmem:[%s2214_s1 + $0x1a0] sm:$0xff]   ;;  %v1803_v1 = vld [vmem:[%s2214_s1 + $0x1e8] sm:$0xff]   ;;  %v1812_v8 = vld [vmem:[%s2214_s1 + $0x170] sm:$0xff]  }
  0x1c   : > { %1555 = vmatpush3.bf16.msra.mxu0 %v1754_v22  ;;  %v1804_v2 = vld [vmem:[%s2214_s1 + $0x128] sm:$0xff]   ;;  %v1808_v5 = vld [vmem:[%s2000_s13 + $0xfc] ss:$40 sps:$4 sm:$0xff]   ;;  %v1811_v7 = vld [vmem:[%s2000_s13 + $0xf8] ss:$40 sps:$4 sm:$0xff]  }
  0x1d   : > { %1595 = vmatpush3.bf16.msra.mxu1 %v1755_v23  ;;  %1556 = vmatprep.subr.bf16.mxu0 %v1756_v24  ;;  %v1805_v3 = vld [vmem:[%s2214_s1 + $0x1a8] sm:$0xff]   ;;  %v1813_v9 = vld [vmem:[%s2214_s1 + $0x1f0] sm:$0xff]   ;;  %v1816_v12 = vld [vmem:[%s2214_s1 + $0x178] sm:$0xff]  }
  0x1e   : > { %1596 = vmatprep.subr.bf16.mxu1 %v1757_v25  ;;  %v1814_v10 = vld [vmem:[%s2214_s1 + $0x130] sm:$0xff]   ;;  %v1817_v13 = vld [vmem:[%s2214_s1 + $0x1f8] sm:$0xff]   ;;  %v1826_v21 = vld [vmem:[%s2214_s1 + $0x200] sm:$0xff]  }
  0x1f   : > { %v1815_v11 = vld [vmem:[%s2214_s1 + $0x1b0] sm:$0xff]   ;;  %v1818_v14 = vld [vmem:[%s2214_s1 + $0x138] sm:$0xff]   ;;  %v1827_v22 = vld [vmem:[%s2214_s1 + $0x208] sm:$0xff]  }
  0x20   : > { %1557 = vmatpush3.bf16.msra.mxu0 %v1758_v26  ;;  %v1819_v15 = vld [vmem:[%s2214_s1 + $0x1b8] sm:$0xff]   ;;  %v1828_v23 = vld [vmem:[%s2000_s13 + $0x64] ss:$40 sps:$4 sm:$0xff]   ;;  %v1830_v24 = vld [vmem:[%s2000_s13 + $0x60] ss:$40 sps:$4 sm:$0xff]  }
  0x21   : > { %1597 = vmatpush3.bf16.msra.mxu1 %v1759_v27  ;;  %1558 = vmatprep.subr.bf16.mxu0 %v1760_v28  ;;  %v1820_v16 = vld [vmem:[%s2000_s13 + $0x10] ss:$40 sps:$4 sm:$0xff]   ;;  %v1822_v17 = vld [vmem:[%s2000_s13 + $0x14] ss:$40 sps:$4 sm:$0xff]   ;;  %v1844_v33 = vld [vmem:[%s2000_s13 + $0x104] ss:$40 sps:$4 sm:$0xff]  }
  0x22   : > { %1598 = vmatprep.subr.bf16.mxu1 %v1761_v29  ;;  %v1823_v18 = vld [vmem:[%s2000_s13 + $0x18] ss:$40 sps:$4 sm:$0xff]   ;;  %v1825_v20 = vld [vmem:[%s2000_s13 + $0x1c] ss:$40 sps:$4 sm:$0xff]   ;;  %v1831_v25 = vld [vmem:[%s2000_s13 + $0x6c] ss:$40 sps:$4 sm:$0xff]  }
  0x23   : > { %v1833_v26 = vld [vmem:[%s2000_s13 + $0x68] ss:$40 sps:$4 sm:$0xff]   ;;  %v1836_v28 = vld [vmem:[%s2000_s13 + $0xb4] ss:$40 sps:$4 sm:$0xff]  }
  0x24   : > { %1559 = vmatpush3.bf16.msra.mxu0 %v1762_v30  ;;  %v1834_v27 = vld [vmem:[%s2214_s1 + $0x210] sm:$0xff]   ;;  %v1839_v29 = vld [vmem:[%s2000_s13 + $0xbc] ss:$40 sps:$4 sm:$0xff]  }
  0x25   : > { %1599 = vmatpush3.bf16.msra.mxu1 %v1763_v31  ;;  %1624 = vmatprep.subr.bf16.mxu0 %v1770_v36  ;;  %v1835_v30 = vld [vmem:[%s2214_s1 + $0x218] sm:$0xff]   ;;  %v1847_v35 = vld [vmem:[%s2000_s13 + $0x10c] ss:$40 sps:$4 sm:$0xff]  }
  0x26   : > { %1664 = vmatprep.subr.bf16.mxu1 %v1771_v37  ;;  %v1838_v31 = vld [vmem:[%s2000_s13 + $0xb0] ss:$40 sps:$4 sm:$0xff]   ;;  %v1843_v36 = vld [vmem:[%s2214_s1 + $0x228] sm:$0xff]  }
  0x27   : > { %1051 = vmatmul.mubr.bf16.vlgmr.msra.gmra.mrb[0].mxu0 %v1764_v32  ;;  %v1841_v32 = vld [vmem:[%s2000_s13 + $0xb8] ss:$40 sps:$4 sm:$0xff]  }
  0x28   : > { %1116 = vmatmul.mubr.bf16.vlgmr.msra.gmra.mrb[0].mxu1 %v1767_v34  ;;  %1625 = vmatpush3.bf16.msra.mxu0 %v1772_v38  ;;  %v1842_v34 = vld [vmem:[%s2214_s1 + $0x220] sm:$0xff]  }
  0x29   : > { %1665 = vmatpush3.bf16.msra.mxu1 %v1773_v39  ;;  %1626 = vmatprep.subr.bf16.mxu0 %v1774_v40  ;;  %v1846_v37 = vld [vmem:[%s2000_s13 + $0x100] ss:$40 sps:$4 sm:$0xff]   ;;  %v1855_v38 = vld [vmem:[%s2000_s13 + $0x24] ss:$40 sps:$4 sm:$0xff]   ;;  %v1850_v40 = vld [vmem:[%s2214_s1 + $0x230] sm:$0xff]  }
  0x2a   : > { %1666 = vmatprep.subr.bf16.mxu1 %v1775_v41  ;;  %1058 = vmatprep.mubr.bf16.mxu0 %v1778_v44  ;;  %v1849_v39 = vld [vmem:[%s2000_s13 + $0x108] ss:$40 sps:$4 sm:$0xff]   ;;  %v1858_v41 = vld [vmem:[%s2000_s13 + $0xc4] ss:$40 sps:$4 sm:$0xff]  }
  0x2b   : > { %1123 = vmatprep.mubr.bf16.mxu1 %v1780_v45  ;;  %v1853_v45 = vld [vmem:[%s2000_s13 + $0x20] ss:$40 sps:$4 sm:$0xff]  }
  0x2c   : > { %1627 = vmatpush3.bf16.msra.mxu0 %v1776_v42  ;;  %v1851_v42 = vld [vmem:[%s2214_s1 + $0x238] sm:$0xff]  }
  0x2d   : > { %1667 = vmatpush3.bf16.msra.mxu1 %v1777_v43  ;;  %1628 = vmatprep.subr.bf16.mxu0 %v1784_v48  ;;  %v1852_v43 = vld [vmem:[%s2214_s1 + $0x240] ss:$0 sps:$4 sm:$0x33]   ;;  %v1861_v48 = vld [vmem:[%s2000_s13 + $0x114] ss:$40 sps:$4 sm:$0xff]  }
  0x2e   : > { %1668 = vmatprep.subr.bf16.mxu1 %v1785_v49  ;;  %v1016_v44 = vsel %vm1014_vm1, %v1852_v43, 0  ;;  %v1863_v49 = vld [vmem:[%s2000_s13 + $0x70] ss:$40 sps:$4 sm:$0xff]  }
  0x2f   : > { %1059 = vmatmul.mubr.bf16.gmra.mrb[4].mxu0 %v1782_v46  ;;  %v1856_v46 = vld [vmem:[%s2000_s13 + $0xc0] ss:$40 sps:$4 sm:$0xff]  }
  0x30   : > { %1124 = vmatmul.mubr.bf16.gmra.mrb[4].mxu1 %v1783_v47  ;;  %1629 = vmatpush3.bf16.msra.mxu0 %v1786_v50  ;;  %v1859_v47 = vld [vmem:[%s2000_s13 + $0x74] ss:$40 sps:$4 sm:$0xff]   ;;  %v1864_v50 = vld [vmem:[%s2000_s13 + $0x110] ss:$40 sps:$4 sm:$0xff]   ;;  %s1423_s13 = sshll.u32 %s2218_s19, 3 }
  0x31   : > { %1669 = vmatpush3.bf16.msra.mxu1 %v1787_v51  ;;  %1630 = vmatprep.subr.bf16.mxu0 %v1788_v52  ;;  %s2200_s22 = scalar_lea.vmem %s2216_s3, %s1423_s13 }
  0x32   : > { %1670 = vmatprep.subr.bf16.mxu1 %v1789_v53  ;;  %1066 = vmatprep.mubr.bf16.mxu0 %v1792_v56  ;;  %v1424_v53 = vld [vmem:[%s2215_s2] ss:$0 sm:$0xff] }
  0x33   : > { %1131 = vmatprep.mubr.bf16.mxu1 %v1794_v57 }
  0x34   : > { %1631 = vmatpush3.bf16.msra.mxu0 %v1790_v54 }
  0x35   : > { %1671 = vmatpush3.bf16.msra.mxu1 %v1791_v55  ;;  %1632 = vmatprep.subr.bf16.mxu0 %v1798_v60 }
  0x36   : > { %1672 = vmatprep.subr.bf16.mxu1 %v1799_v61 }
  0x37   : > { %1067 = vmatmul.mubr.bf16.gmra.mrb[8].mxu0 %v1796_v58 }
  0x38   : > { %1132 = vmatmul.mubr.bf16.gmra.mrb[8].mxu1 %v1797_v59  ;;  %1633 = vmatpush3.bf16.msra.mxu0 %v1800_v62 }
  0x39   : > { %1673 = vmatpush3.bf16.msra.mxu1 %v1801_v63  ;;  %1634 = vmatprep.subr.bf16.mxu0 %v1802_v0 }
  0x3a   : > { %1674 = vmatprep.subr.bf16.mxu1 %v1803_v1  ;;  %1074 = vmatprep.mubr.bf16.mxu0 %v1806_v4 }
  0x3b   : > { %1139 = vmatprep.mubr.bf16.mxu1 %v1808_v5 }
  0x3c   : > { %1635 = vmatpush3.bf16.msra.mxu0 %v1804_v2 }
  0x3d   : > { %1675 = vmatpush3.bf16.msra.mxu1 %v1805_v3  ;;  %1636 = vmatprep.subr.bf16.mxu0 %v1812_v8 }
  0x3e   : > { %1676 = vmatprep.subr.bf16.mxu1 %v1813_v9 }
  0x3f   : > { %1075 = vmatmul.mubr.bf16.gmra.mrb[12].mxu0 %v1810_v6 }
  0x40   : > { %1140 = vmatmul.mubr.bf16.gmra.mrb[12].mxu1 %v1811_v7  ;;  %1637 = vmatpush3.bf16.msra.mxu0 %v1814_v10 }
  0x41   : > { %1677 = vmatpush3.bf16.msra.mxu1 %v1815_v11  ;;  %1638 = vmatprep.subr.bf16.mxu0 %v1816_v12 }
  0x42   : > { %1678 = vmatprep.subr.bf16.mxu1 %v1817_v13  ;;  %1180 = vmatprep.mubr.bf16.mxu0 %v1822_v17 }
  0x43   : > { %1245 = vmatprep.mubr.bf16.mxu1 %v1825_v20 }
  0x44   : > { %1639 = vmatpush3.bf16.msra.mxu0 %v1818_v14 }
  0x45   : > { %1679 = vmatpush3.bf16.msra.mxu1 %v1819_v15  ;;  %1278 = vmatprep.subr.bf16.mxu0 %v1873_v19 }
  0x46   : > { %1704 = vmatprep.subr.bf16.mxu1 %v1873_v19 }
  0x47   : > { %1181 = vmatmul.mubr.bf16.vlgmr.msra.gmra.mrb[16].mxu0 %v1820_v16 }
  0x48   : > { %1246 = vmatmul.mubr.bf16.vlgmr.msra.gmra.mrb[16].mxu1 %v1823_v18  ;;  %1279 = vmatpush1.bf16.msra.mxu0 %v1826_v21 }
  0x49   : > { %1713 = vmatpush1.bf16.msra.mxu1 %v1826_v21  ;;  %1280 = vmatprep.subr.bf16.mxu0 %v1873_v19 }
  0x4a   : > { %1705 = vmatprep.subr.bf16.mxu1 %v1873_v19  ;;  %1188 = vmatprep.mubr.bf16.mxu0 %v1828_v23 }
  0x4b   : > { %1253 = vmatprep.mubr.bf16.mxu1 %v1831_v25 }
  0x4c   : > { %1281 = vmatpush1.bf16.msra.mxu0 %v1827_v22 }
  0x4d   : > { %1714 = vmatpush1.bf16.msra.mxu1 %v1827_v22  ;;  %1282 = vmatprep.subr.bf16.mxu0 %v1873_v19 }
  0x4e   : > { %1706 = vmatprep.subr.bf16.mxu1 %v1873_v19 }
  0x4f   : > { %1189 = vmatmul.mubr.bf16.gmra.mrb[20].mxu0 %v1830_v24 }
  0x50   : > { %1196 = vmatprep.mubr.bf16.mxu0 %v1836_v28  ;;  %1254 = vmatmul.mubr.bf16.gmra.mrb[20].mxu1 %v1833_v26 }
  0x51   : > { %1283 = vmatpush1.bf16.msra.mxu0 %v1834_v27  ;;  %1715 = vmatpush1.bf16.msra.mxu1 %v1834_v27 }
  0x52   : > { %1284 = vmatprep.subr.bf16.mxu0 %v1873_v19  ;;  %1707 = vmatprep.subr.bf16.mxu1 %v1873_v19 }
  0x53   : > { %1261 = vmatprep.mubr.bf16.mxu1 %v1839_v29 }
  0x55   : > { %1285 = vmatpush1.bf16.msra.mxu0 %v1835_v30  ;;  %1716 = vmatpush1.bf16.msra.mxu1 %v1835_v30 }
  0x56   : > { %1286 = vmatprep.subr.bf16.mxu0 %v1873_v19  ;;  %1708 = vmatprep.subr.bf16.mxu1 %v1873_v19 }
  0x57   : > { %1197 = vmatmul.mubr.bf16.gmra.mrb[24].mxu0 %v1838_v31 }
  0x58   : > { %1204 = vmatprep.mubr.bf16.mxu0 %v1844_v33  ;;  %1262 = vmatmul.mubr.bf16.gmra.mrb[24].mxu1 %v1841_v32 }
  0x59   : > { %1287 = vmatpush1.bf16.msra.mxu0 %v1842_v34  ;;  %1717 = vmatpush1.bf16.msra.mxu1 %v1842_v34 }
  0x5a   : > { %1288 = vmatprep.subr.bf16.mxu0 %v1873_v19  ;;  %1709 = vmatprep.subr.bf16.mxu1 %v1873_v19 }
  0x5b   : > { %1269 = vmatprep.mubr.bf16.mxu1 %v1847_v35 }
  0x5d   : > { %1289 = vmatpush1.bf16.msra.mxu0 %v1843_v36  ;;  %1718 = vmatpush1.bf16.msra.mxu1 %v1843_v36 }
  0x5e   : > { %1290 = vmatprep.subr.bf16.mxu0 %v1873_v19  ;;  %1710 = vmatprep.subr.bf16.mxu1 %v1873_v19 }
  0x5f   : > { %1205 = vmatmul.mubr.bf16.gmra.mrb[28].mxu0 %v1846_v37 }
  0x60   : > { %1538 = vmatprep.mubr.msk.bf16.mxu0 %vm1001_vm0, %v1855_v38  ;;  %1270 = vmatmul.mubr.bf16.gmra.mrb[28].mxu1 %v1849_v39 }
  0x61   : > { %1291 = vmatpush1.bf16.msra.mxu0 %v1850_v40  ;;  %1719 = vmatpush1.bf16.msra.mxu1 %v1850_v40 }
  0x62   : > { %1292 = vmatprep.subr.bf16.mxu0 %v1873_v19  ;;  %1711 = vmatprep.subr.bf16.mxu1 %v1873_v19 }
  0x63   : > { %1540 = vmatprep.mubr.msk.bf16.mxu1 %vm1001_vm0, %v1858_v41 }
  0x65   : > { %1293 = vmatpush1.bf16.msra.mxu0 %v1851_v42  ;;  %1720 = vmatpush1.bf16.msra.mxu1 %v1851_v42 }
  0x66   : > { %1294 = vmatprep.subr.bf16.mxu0 %v1873_v19  ;;  %1712 = vmatprep.subr.bf16.mxu1 %v1873_v19 }
  0x69   : > { %1295 = vmatpush1.bf16.msra.mxu0 %v1016_v44  ;;  %1721 = vmatpush1.bf16.msra.mxu1 %v1016_v44 }
  0x6c   : > { %1311 = vmatmul.mubr.bf16.vlgmr.msra.gmra.mrb[32].mxu0 %v1853_v45  ;;  %1327 = vmatmul.mubr.bf16.vlgmr.msra.gmra.mrb[32].mxu1 %v1856_v46 }
  0x6d   : > { %1539 = vmatprep.mubr.msk.bf16.mxu0 %vm1001_vm0, %v1859_v47  ;;  %1541 = vmatprep.mubr.msk.bf16.mxu1 %vm1001_vm0, %v1861_v48 }
  0x74   : > { %1319 = vmatmul.mubr.bf16.gmra.mrb[36].mxu0 %v1863_v49  ;;  %1335 = vmatmul.mubr.bf16.gmra.mrb[36].mxu1 %v1864_v50 }
  0xfa   : > { %v1560_v51 = vpop.f32.mrb[0].mxu0 }
  0xfb   : > { %v1600_v52 = vpop.f32.mrb[0].mxu1  ;;  %v1561_v54 = vpop.f32.mrb[1].mxu0 }
  0xfc   : > { %v1562_v55 = vadd.f32 %v1561_v54, %v1560_v51  ;;  %v1601_v56 = vpop.f32.mrb[1].mxu1  ;;  %v1563_v57 = vpop.f32.mrb[2].mxu0 }
  0xfd   : > { %v1602_v58 = vadd.f32 %v1601_v56, %v1600_v52  ;;  %v1603_v59 = vpop.f32.mrb[2].mxu1  ;;  %v1564_v60 = vpop.f32.mrb[3].mxu0 }
  0xfe   : > { %v1053_v61 = vadd.f32 %v1562_v55, %v1424_v53  ;;  %v1565_v62 = vadd.f32 %v1564_v60, %v1563_v57  ;;  %v1604_v63 = vpop.f32.mrb[3].mxu1 }
  0xff   : > { %v1605_v0 = vadd.f32 %v1604_v63, %v1603_v59 }
 0x100   : > { %v1118_v1 = vadd.f32 %v1602_v58, %v1053_v61  ;;  %v1056_v2 = vadd.f32 %v1565_v62, %v1424_v53 }
 0x102   : > { %v1121_v3 = vadd.f32 %v1605_v0, %v1056_v2  ;;  %v1566_v4 = vpop.f32.mrb[4].mxu0 }
 0x103   : > { %v1606_v5 = vpop.f32.mrb[4].mxu1  ;;  %v1567_v6 = vpop.f32.mrb[5].mxu0 }
 0x104   : > { %v1568_v7 = vadd.f32 %v1567_v6, %v1566_v4  ;;  %v1607_v8 = vpop.f32.mrb[5].mxu1  ;;  %v1569_v9 = vpop.f32.mrb[6].mxu0 }
 0x105   : > { %v1608_v10 = vadd.f32 %v1607_v8, %v1606_v5  ;;  %v1609_v11 = vpop.f32.mrb[6].mxu1  ;;  %v1570_v12 = vpop.f32.mrb[7].mxu0 }
 0x106   : > { %v1061_v13 = vadd.f32 %v1568_v7, %v1424_v53  ;;  %v1571_v14 = vadd.f32 %v1570_v12, %v1569_v9  ;;  %v1610_v15 = vpop.f32.mrb[7].mxu1 }
 0x107   : > { %v1611_v16 = vadd.f32 %v1610_v15, %v1609_v11 }
 0x108   : > { %v1126_v17 = vadd.f32 %v1608_v10, %v1061_v13  ;;  %v1064_v18 = vadd.f32 %v1571_v14, %v1424_v53 }
 0x10a   : > { %v1129_v19 = vadd.f32 %v1611_v16, %v1064_v18  ;;  %v1572_v20 = vpop.f32.mrb[8].mxu0 }
 0x10b   : > { %v1612_v21 = vpop.f32.mrb[8].mxu1  ;;  %v1573_v22 = vpop.f32.mrb[9].mxu0 }
 0x10c   : > { %v1574_v23 = vadd.f32 %v1573_v22, %v1572_v20  ;;  %v1613_v24 = vpop.f32.mrb[9].mxu1  ;;  %v1575_v25 = vpop.f32.mrb[10].mxu0 }
 0x10d   : > { %v1614_v26 = vadd.f32 %v1613_v24, %v1612_v21  ;;  %v1615_v27 = vpop.f32.mrb[10].mxu1  ;;  %v1576_v28 = vpop.f32.mrb[11].mxu0 }
 0x10e   : > { %v1069_v29 = vadd.f32 %v1574_v23, %v1424_v53  ;;  %v1577_v30 = vadd.f32 %v1576_v28, %v1575_v25  ;;  %v1616_v31 = vpop.f32.mrb[11].mxu1 }
 0x10f   : > { %v1617_v32 = vadd.f32 %v1616_v31, %v1615_v27 }
 0x110   : > { %v1134_v33 = vadd.f32 %v1614_v26, %v1069_v29  ;;  %v1072_v34 = vadd.f32 %v1577_v30, %v1424_v53 }
 0x112   : > { %v1137_v35 = vadd.f32 %v1617_v32, %v1072_v34  ;;  %v1578_v36 = vpop.f32.mrb[12].mxu0 }
 0x113   : > { %v1618_v37 = vpop.f32.mrb[12].mxu1  ;;  %v1579_v38 = vpop.f32.mrb[13].mxu0 }
 0x114   : > { %v1619_v39 = vpop.f32.mrb[13].mxu1  ;;  %v1580_v40 = vadd.f32 %v1579_v38, %v1578_v36  ;;  %v1581_v42 = vpop.f32.mrb[14].mxu0 }
 0x115   : > { %v1620_v41 = vadd.f32 %v1619_v39, %v1618_v37  ;;  %v1621_v43 = vpop.f32.mrb[14].mxu1  ;;  %v1582_v44 = vpop.f32.mrb[15].mxu0 }
 0x116   : > { %v1622_v45 = vpop.f32.mrb[15].mxu1  ;;  %v1077_v46 = vadd.f32 %v1580_v40, %v1424_v53  ;;  %v1583_v47 = vadd.f32 %v1582_v44, %v1581_v42 }
 0x117   : > { %v1623_v48 = vadd.f32 %v1622_v45, %v1621_v43 }
 0x118   : > { %v1142_v49 = vadd.f32 %v1620_v41, %v1077_v46  ;;  %v1080_v50 = vadd.f32 %v1583_v47, %v1424_v53 }
 0x11a   : > { %v1145_v51 = vadd.f32 %v1623_v48, %v1080_v50  ;;  %v1640_v52 = vpop.f32.mrb[16].mxu0 }
 0x11b   : > { %v1641_v54 = vpop.f32.mrb[17].mxu0  ;;  %v1680_v55 = vpop.f32.mrb[16].mxu1 }
 0x11c   : > { %v1642_v56 = vadd.f32 %v1641_v54, %v1640_v52  ;;  %v1643_v57 = vpop.f32.mrb[18].mxu0  ;;  %v1681_v58 = vpop.f32.mrb[17].mxu1 }
 0x11d   : > { %v1644_v59 = vpop.f32.mrb[19].mxu0  ;;  %v1682_v61 = vadd.f32 %v1681_v58, %v1680_v55  ;;  %v1683_v62 = vpop.f32.mrb[18].mxu1 }
 0x11e   : > { %v1183_v60 = vadd.f32 %v1642_v56, %v1118_v1  ;;  %v1645_v63 = vadd.f32 %v1644_v59, %v1643_v57  ;;  %v1684_v0 = vpop.f32.mrb[19].mxu1 }
 0x11f   : > { %v1685_v4 = vadd.f32 %v1684_v0, %v1683_v62 }
 0x120   : > { %v1186_v2 = vadd.f32 %v1645_v63, %v1121_v3  ;;  %v1248_v5 = vadd.f32 %v1682_v61, %v1183_v60 }
 0x122   : > { %v1646_v6 = vpop.f32.mrb[20].mxu0  ;;  %v1251_v7 = vadd.f32 %v1685_v4, %v1186_v2 }
 0x123   : > { %v1647_v8 = vpop.f32.mrb[21].mxu0  ;;  %v1686_v9 = vpop.f32.mrb[20].mxu1 }
 0x124   : > { %v1648_v53 = vadd.f32 %v1647_v8, %v1646_v6  ;;  %v1649_v10 = vpop.f32.mrb[22].mxu0  ;;  %v1687_v11 = vpop.f32.mrb[21].mxu1 }
 0x125   : > { %v1650_v12 = vpop.f32.mrb[23].mxu0  ;;  %v1688_v14 = vadd.f32 %v1687_v11, %v1686_v9  ;;  %v1689_v16 = vpop.f32.mrb[22].mxu1 }
 0x126   : > { %v1191_v13 = vadd.f32 %v1648_v53, %v1126_v17  ;;  %v1651_v15 = vadd.f32 %v1650_v12, %v1649_v10  ;;  %v1690_v1 = vpop.f32.mrb[23].mxu1 }
 0x127   : > { %v1691_v20 = vadd.f32 %v1690_v1, %v1689_v16 }
 0x128   : > { %v1194_v18 = vadd.f32 %v1651_v15, %v1129_v19  ;;  %v1256_v21 = vadd.f32 %v1688_v14, %v1191_v13 }
 0x12a   : > { %v1652_v22 = vpop.f32.mrb[24].mxu0  ;;  %v1259_v3 = vadd.f32 %v1691_v20, %v1194_v18 }
 0x12b   : > { %v1653_v23 = vpop.f32.mrb[25].mxu0  ;;  %v1692_v25 = vpop.f32.mrb[24].mxu1 }
 0x12c   : > { %v1654_v24 = vadd.f32 %v1653_v23, %v1652_v22  ;;  %v1655_v26 = vpop.f32.mrb[26].mxu0  ;;  %v1693_v27 = vpop.f32.mrb[25].mxu1 }
 0x12d   : > { %v1656_v28 = vpop.f32.mrb[27].mxu0  ;;  %v1694_v30 = vadd.f32 %v1693_v27, %v1692_v25  ;;  %v1695_v32 = vpop.f32.mrb[26].mxu1 }
 0x12e   : > { %v1199_v29 = vadd.f32 %v1654_v24, %v1134_v33  ;;  %v1657_v31 = vadd.f32 %v1656_v28, %v1655_v26  ;;  %v1696_v17 = vpop.f32.mrb[27].mxu1 }
 0x12f   : > { %v1697_v36 = vadd.f32 %v1696_v17, %v1695_v32 }
 0x130   : > { %v1202_v34 = vadd.f32 %v1657_v31, %v1137_v35  ;;  %v1264_v37 = vadd.f32 %v1694_v30, %v1199_v29 }
 0x132   : > { %v1658_v38 = vpop.f32.mrb[28].mxu0  ;;  %v1267_v19 = vadd.f32 %v1697_v36, %v1202_v34 }
 0x133   : > { %v1659_v39 = vpop.f32.mrb[29].mxu0  ;;  %v1698_v41 = vpop.f32.mrb[28].mxu1 }
 0x134   : > { %v1660_v40 = vadd.f32 %v1659_v39, %v1658_v38  ;;  %v1661_v42 = vpop.f32.mrb[30].mxu0  ;;  %v1699_v43 = vpop.f32.mrb[29].mxu1 }
 0x135   : > { %v1662_v44 = vpop.f32.mrb[31].mxu0  ;;  %v1700_v46 = vadd.f32 %v1699_v43, %v1698_v41  ;;  %v1701_v33 = vpop.f32.mrb[30].mxu1 }
 0x136   : > { %v1207_v45 = vadd.f32 %v1660_v40, %v1142_v49  ;;  %v1663_v47 = vadd.f32 %v1662_v44, %v1661_v42  ;;  %v1702_v48 = vpop.f32.mrb[31].mxu1 }
 0x137   : > { %v1703_v52 = vadd.f32 %v1702_v48, %v1701_v33 }
 0x138   : > { %v1210_v50 = vadd.f32 %v1663_v47, %v1145_v51  ;;  %v1272_v54 = vadd.f32 %v1700_v46, %v1207_v45 }
 0x13a   : > { %v1275_v35 = vadd.f32 %v1703_v52, %v1210_v50 }
 0x13f   : > { %v1312_v55 = vpop.f32.mrb[32].mxu0  ;;  %v1328_v57 = vpop.f32.mrb[32].mxu1 }
 0x140   : > { %v1313_v56 = vadd.f32 %v1312_v55, %v1248_v5  ;;  %v1314_v58 = vpop.f32.mrb[33].mxu0  ;;  %v1329_v49 = vadd.f32 %v1328_v57, %v1264_v37  ;;  %v1330_v59 = vpop.f32.mrb[33].mxu1 }
 0x141   : > { %v1315_v51 = vpop.f32.mrb[34].mxu0  ;;  %v1331_v62 = vpop.f32.mrb[34].mxu1 }
 0x142   : > { %v1343_v60 = vmax.f32 %v1313_v56, 0.0  ;;  %v1316_v61 = vadd.f32 %v1315_v51, %v1251_v7  ;;  %v1317_v63 = vpop.f32.mrb[35].mxu0  ;;  %v1347_v0 = vmax.f32 %v1329_v49, 0.0  ;;  %v1332_v2 = vadd.f32 %v1331_v62, %v1267_v19  ;;  %v1333_v4 = vpop.f32.mrb[35].mxu1 }
 0x144   : > { %1351 = vst [vmem:[%s2200_s22] sm:$0xff] %v1343_v60  ;;  %v1344_v5 = vmax.f32 %v1316_v61, 0.0  ;;  %1355 = vst [vmem:[%s2200_s22 + $0x20] sm:$0xff] %v1347_v0  ;;  %v1348_v6 = vmax.f32 %v1332_v2, 0.0 }
 0x146   : > { %1352 = vst [vmem:[%s2200_s22 + $0x8] sm:$0xff] %v1344_v5  ;;  %1356 = vst [vmem:[%s2200_s22 + $0x28] sm:$0xff] %v1348_v6 }
 0x147   : > { %v1320_v8 = vpop.f32.mrb[36].mxu0  ;;  %v1336_v9 = vpop.f32.mrb[36].mxu1 }
 0x148   : > { %v1321_v53 = vadd.f32 %v1320_v8, %v1256_v21  ;;  %v1322_v10 = vpop.f32.mrb[37].mxu0  ;;  %v1337_v7 = vadd.f32 %v1336_v9, %v1272_v54  ;;  %v1338_v11 = vpop.f32.mrb[37].mxu1 }
 0x149   : > { %v1323_v12 = vpop.f32.mrb[38].mxu0  ;;  %v1339_v15 = vpop.f32.mrb[38].mxu1 }
 0x14a   : > { %v1345_v13 = vmax.f32 %v1321_v53, 0.0  ;;  %v1324_v14 = vadd.f32 %v1323_v12, %v1259_v3  ;;  %v1325_v16 = vpop.f32.mrb[39].mxu0  ;;  %v1349_v1 = vmax.f32 %v1337_v7, 0.0  ;;  %v1340_v18 = vadd.f32 %v1339_v15, %v1275_v35  ;;  %v1341_v20 = vpop.f32.mrb[39].mxu1 }
 0x14c   : > { %1353 = vst [vmem:[%s2200_s22 + $0x10] sm:$0xff] %v1345_v13  ;;  %v1346_v22 = vmax.f32 %v1324_v14, 0.0  ;;  %1357 = vst [vmem:[%s2200_s22 + $0x30] sm:$0xff] %v1349_v1  ;;  %v1350_v23 = vmax.f32 %v1340_v18, 0.0 }
 0x14e   : > { %1354 = vst [vmem:[%s2200_s22 + $0x18] sm:$0xff] %v1346_v22  ;;  %1358 = vst [vmem:[%s2200_s22 + $0x38] sm:$0xff] %v1350_v23 }
 0x14f PF: > { %s13_s12 = sadd.s32 1, %s1871_s12  }
 0x150   : > { %p10_p4 = scmp.ge.s32.totalorder %s13_s12, 4  }
 0x152   :  { %12 = sbr.rel (!%p10_p4) target bundleno = 1 (0x1), region = 62 }

</bundles_post_ra>
